<compile_context>
chip_gen: v7x
topology: tpu7x:2x2x1
jax: 0.10.0
libtpu: 0.0.40
codegen_flags: <defaults>
</compile_context>

<pallas_src>
import itertools

import numpy as np
import jax
import jax.numpy as jnp
from jax.experimental import pallas as pl
from jax.experimental.pallas import tpu as pltpu

# HungarianMatcher.__init__ defaults
COST_CLASS = 1.0
COST_BBOX = 1.0
COST_GIOU = 1.0
ALPHA = 0.25
GAMMA = 2.0  # exploited as an explicit square in the kernel

_MAX_TILE_BQ = 512  # rows per grid step; keeps blocks well under scoped VMEM


def _round_up(x, m):
    return ((x + m - 1) // m) * m


def _choose_tiling(bq):
    """Split BQ into near-equal 8-aligned tiles of at most _MAX_TILE_BQ rows."""
    n_tiles = max(1, -(-bq // _MAX_TILE_BQ))
    tile = _round_up(-(-bq // n_tiles), 8)
    return tile, n_tiles * tile


def _newton_recip(x):
    """approx reciprocal (EUP) + one Newton step (VALU) ~ 1e-6 rel error."""
    r = pl.reciprocal(x, approx=True)
    return r * (2.0 - x * r)


def _cost_kernel(logits_ref, boxes_ref, labT_ref, tseg_ref, c_ref):
    # ---- focal-loss classification cost (use_multi_class=True path) -------
    x = logits_ref[...].astype(jnp.float32)            # (TB, C)
    # One exp serves sigmoid AND both softplus terms:
    #   e = exp(-|x|)
    #   sigmoid(x)        = 1/(1+e)  if x >= 0  else  e/(1+e)
    #   -log(sigmoid(x))  = max(-x, 0) + log(1+e)
    #   -log(1-sigmoid)   = max( x, 0) + log(1+e)
    e = jnp.exp(-jnp.abs(x))
    inv1pe = _newton_recip(1.0 + e)
    p = jnp.where(x >= 0, inv1pe, e * inv1pe)
    one_m_p = 1.0 - p
    log1pe = jnp.log(1.0 + e)
    nlog_p = jnp.maximum(-x, 0.0) + log1pe
    nlog_1mp = jnp.maximum(x, 0.0) + log1pe
    neg = (1.0 - ALPHA) * (p * p) * nlog_1mp            # gamma == 2 -> square
    pos = ALPHA * (one_m_p * one_m_p) * nlog_p
    # (TB, C) @ (C, T_pad) on the MXU (lane-dense N).
    acc = COST_CLASS * jnp.dot(pos - neg, labT_ref[...],
                               preferred_element_type=jnp.float32)

    # ---- pairwise L1 (cdist) on (center, width) ----------------------------
    boxes = boxes_ref[...].astype(jnp.float32)          # (TB, 2)
    oc = boxes[:, 0:1]                                  # (TB, 1)
    ow = boxes[:, 1:2]
    tseg = tseg_ref[...].astype(jnp.float32)            # (2, T_pad)
    tc = tseg[0:1, :]                                   # (1, T_pad)
    tw = tseg[1:2, :]
    acc += COST_BBOX * (jnp.abs(oc - tc) + jnp.abs(ow - tw))

    # ---- pairwise GIoU of 1-D segments (proposal_cw_to_se) -----------------
    os_ = oc - 0.5 * ow
    oe = oc + 0.5 * ow
    ts = tc - 0.5 * tw
    te = tc + 0.5 * tw
    inter = jnp.maximum(jnp.minimum(oe, te) - jnp.maximum(os_, ts), 0.0)
    # tiny clamp only protects zero-padded rows/cols (sliced off anyway)
    union = jnp.maximum((oe - os_) + (te - ts) - inter, 1e-8)
    enclose = jnp.maximum(jnp.maximum(oe, te) - jnp.minimum(os_, ts), 1e-8)
    giou = inter * _newton_recip(union) - (enclose - union) * _newton_recip(enclose)
    acc += COST_GIOU * (-giou)

    c_ref[...] = acc


@jax.jit
def hungarian_cost_matrix(pred_logits, pred_boxes_cw, tgt_labels_multihot,
                          tgt_segments_cw):
    """Returns the matching cost matrix C of shape (bs, num_queries, T)."""
    bs, nq, nc = pred_logits.shape
    T = tgt_segments_cw.shape[0]
    bq = bs * nq

    logits = pred_logits.reshape(bq, nc).astype(jnp.float32)     # (BQ, C)
    boxes = pred_boxes_cw.reshape(bq, 2).astype(jnp.float32)     # (BQ, 2) cw
    labT = tgt_labels_multihot.astype(jnp.float32).T             # (C, T)
    tseg = tgt_segments_cw.astype(jnp.float32).T                 # (2, T) cw

    # Lane-dense padding: T -> multiple of 128, rows -> near-equal 8-aligned tiles.
    t_pad = _round_up(max(T, 1), 128)
    tile_bq, bq_pad = _choose_tiling(bq)

    logits = jnp.pad(logits, ((0, bq_pad - bq), (0, 0)))
    boxes = jnp.pad(boxes, ((0, bq_pad - bq), (0, 0)))
    labT = jnp.pad(labT, ((0, 0), (0, t_pad - T)))
    tseg = jnp.pad(tseg, ((0, 0), (0, t_pad - T)))

    c_full = pl.pallas_call(
        _cost_kernel,
        out_shape=jax.ShapeDtypeStruct((bq_pad, t_pad), jnp.float32),
        grid=(bq_pad // tile_bq,),
        in_specs=[
            pl.BlockSpec((tile_bq, nc), lambda i: (i, 0)),   # logits (tiled)
            pl.BlockSpec((tile_bq, 2), lambda i: (i, 0)),    # boxes  (tiled)
            pl.BlockSpec((nc, t_pad), lambda i: (0, 0)),     # labT (resident)
            pl.BlockSpec((2, t_pad), lambda i: (0, 0)),      # tseg (resident)
        ],
        out_specs=pl.BlockSpec((tile_bq, t_pad), lambda i: (i, 0)),
        compiler_params=pltpu.CompilerParams(
            dimension_semantics=("parallel",)),
    )(logits, boxes, labT, tseg)

    return c_full[:bq, :T].reshape(bs, nq, T)


def _reference_cost_matrix(pred_logits, pred_boxes_cw, tgt_labels_multihot,
                           tgt_segments_cw):
    """Pure-JAX reference mirroring the PyTorch forward (for a sanity check)."""
    bs, nq, nc = pred_logits.shape
    prob = jax.nn.sigmoid(pred_logits.reshape(bs * nq, nc).astype(jnp.float32))
    neg = (1 - ALPHA) * prob ** GAMMA * (-jnp.log(1 - prob + 1e-8))
    pos = ALPHA * (1 - prob) ** GAMMA * (-jnp.log(prob + 1e-8))
    cost_class = (pos - neg) @ tgt_labels_multihot.astype(jnp.float32).T

    ob = pred_boxes_cw.reshape(bs * nq, 2).astype(jnp.float32)
    tb = tgt_segments_cw.astype(jnp.float32)
    cost_bbox = jnp.abs(ob[:, None, :] - tb[None, :, :]).sum(-1)

    def cw_to_se(x):
        return jnp.stack([x[:, 0] - 0.5 * x[:, 1], x[:, 0] + 0.5 * x[:, 1]], -1)

    o = cw_to_se(ob)
    t = cw_to_se(tb)
    inter = jnp.maximum(
        jnp.minimum(o[:, None, 1], t[None, :, 1])
        - jnp.maximum(o[:, None, 0], t[None, :, 0]), 0.0)
    union = (o[:, None, 1] - o[:, None, 0]) + (t[None, :, 1] - t[None, :, 0]) - inter
    iou = inter / union
    enclose = (jnp.maximum(o[:, None, 1], t[None, :, 1])
               - jnp.minimum(o[:, None, 0], t[None, :, 0]))
    giou = iou - (enclose - union) / enclose

    C = COST_BBOX * cost_bbox + COST_CLASS * cost_class + COST_GIOU * (-giou)
    return C.reshape(bs, nq, -1)


# TODO(synk): linear_sum_assignment (Hungarian algorithm) is sequential /
# combinatorial and has no clean Pallas equivalent; it is done on the host.
def _exact_assignment(cost):
    """Exact min-cost 1-to-1 assignment by brute force (small T only)."""
    nq, t = cost.shape
    best_rows, best_cost = None, np.inf
    for perm in itertools.permutations(range(nq), t):
        s = cost[list(perm), list(range(t))].sum()
        if s < best_cost:
            best_cost, best_rows = s, perm
    rows = np.asarray(best_rows, dtype=np.int64)
    cols = np.arange(t, dtype=np.int64)
    order = np.argsort(rows)
    return rows[order], cols[order]


def hungarian_matcher_forward(pred_logits, pred_boxes_cw, gt_segments, gt_labels):
    """Mirrors HungarianMatcher.forward (focal_loss_cost, giou, multi-class)."""
    tgt_segments = jnp.concatenate(gt_segments, axis=0)
    tgt_labels = jnp.concatenate(gt_labels, axis=0)
    C = hungarian_cost_matrix(pred_logits, pred_boxes_cw, tgt_labels, tgt_segments)
    C_np = np.asarray(jax.block_until_ready(C))

    sizes = [int(s.shape[0]) for s in gt_segments]
    indices = []
    off = 0
    for i, sz in enumerate(sizes):
        c = C_np[i, :, off:off + sz]
        indices.append(_exact_assignment(c))
        off += sz
    return C, indices


if __name__ == "__main__":
    key = jax.random.PRNGKey(0)
    bs, num_queries, num_classes = 2, 8, 8
    sizes = [2, 3]  # ground-truth segments per batch element

    k1, k2, k3, k4, k5 = jax.random.split(key, 5)
    pred_logits = jax.random.normal(k1, (bs, num_queries, num_classes),
                                    dtype=jnp.float32)
    centers = jax.random.uniform(k2, (bs, num_queries, 1), minval=0.2, maxval=0.8)
    widths = jax.random.uniform(k3, (bs, num_queries, 1), minval=0.05, maxval=0.3)
    pred_boxes = jnp.concatenate([centers, widths], axis=-1)  # (bs, nq, 2) cw

    gt_segments, gt_labels = [], []
    keys = jax.random.split(k4, len(sizes))
    lkeys = jax.random.split(k5, len(sizes))
    for i, sz in enumerate(sizes):
        ck, wk = jax.random.split(keys[i])
        gc = jax.random.uniform(ck, (sz, 1), minval=0.2, maxval=0.8)
        gw = jax.random.uniform(wk, (sz, 1), minval=0.05, maxval=0.3)
        gt_segments.append(jnp.concatenate([gc, gw], axis=-1))
        ids = jax.random.randint(lkeys[i], (sz,), 0, num_classes)
        gt_labels.append(jax.nn.one_hot(ids, num_classes, dtype=jnp.float32))

    C, indices = hungarian_matcher_forward(pred_logits, pred_boxes,
                                           gt_segments, gt_labels)

    # Sanity check against a pure-JAX mirror of the PyTorch math.  The kernel
    # drops the 1e-8 log-eps (softplus form) and uses an approx reciprocal +
    # one Newton step for the sigmoid / GIoU divides, so allow ~1e-3 slack.
    C_ref = _reference_cost_matrix(pred_logits, pred_boxes,
                                   jnp.concatenate(gt_labels, 0),
                                   jnp.concatenate(gt_segments, 0))
    np.testing.assert_allclose(np.asarray(C), np.asarray(C_ref),
                               rtol=1e-3, atol=1e-3)
    for (i_idx, j_idx), sz in zip(indices, sizes):
        assert i_idx.dtype == np.int64 and j_idx.dtype == np.int64
        assert len(i_idx) == len(j_idx) == min(num_queries, sz)

    jax.block_until_ready(C)
    print("KERNEL_OK")
</pallas_src>

<mosaic_0001>
module attributes {stable_mosaic.version = 11 : i64} {
  func.func @_cost_kernel(%arg0: i32, %arg1: memref<16x8xf32, #tpu.memory_space<vmem>>, %arg2: memref<16x2xf32, #tpu.memory_space<vmem>>, %arg3: memref<8x128xf32, #tpu.memory_space<vmem>>, %arg4: memref<2x128xf32, #tpu.memory_space<vmem>>, %arg5: memref<16x128xf32, #tpu.memory_space<vmem>>) attributes {dimension_semantics = [#tpu.dimension_semantics<parallel>], iteration_bounds = array<i64: 1>, scalar_prefetch = 0 : i64, scratch_operands = 0 : i64, tpu.core_type = #tpu.core_type<tc>, window_params = [{transform_indices = @transform_0, window_bounds = array<i64: 16, 8>}, {transform_indices = @transform_1, window_bounds = array<i64: 16, 2>}, {pipeline_mode = #tpu.pipeline_mode<synchronous>, transform_indices = @transform_2, window_bounds = array<i64: 8, 128>}, {pipeline_mode = #tpu.pipeline_mode<synchronous>, transform_indices = @transform_3, window_bounds = array<i64: 2, 128>}, {transform_indices = @transform_4, window_bounds = array<i64: 16, 128>}]} {
    %c0 = arith.constant 0 : index
    %c0_0 = arith.constant 0 : index
    %0 = vector.load %arg1[%c0, %c0_0] : memref<16x8xf32, #tpu.memory_space<vmem>>, vector<16x8xf32>
    %1 = math.absf %0 : vector<16x8xf32>
    %cst = arith.constant 0.000000e+00 : f32
    %2 = vector.broadcast %cst : f32 to vector<16x8xf32>
    %3 = arith.subf %2, %1 : vector<16x8xf32>
    %4 = math.exp %3 : vector<16x8xf32>
    %cst_1 = arith.constant 1.000000e+00 : f32
    %5 = vector.broadcast %cst_1 : f32 to vector<16x8xf32>
    %6 = arith.addf %5, %4 : vector<16x8xf32>
    %7 = tpu.reciprocal %6 {approx = true} : vector<16x8xf32> -> vector<16x8xf32>
    %8 = arith.mulf %6, %7 : vector<16x8xf32>
    %cst_2 = arith.constant 2.000000e+00 : f32
    %9 = vector.broadcast %cst_2 : f32 to vector<16x8xf32>
    %10 = arith.subf %9, %8 : vector<16x8xf32>
    %11 = arith.mulf %7, %10 : vector<16x8xf32>
    %cst_3 = arith.constant 0.000000e+00 : f32
    %12 = vector.broadcast %cst_3 : f32 to vector<16x8xf32>
    %13 = arith.cmpf oge, %0, %12 : vector<16x8xf32>
    %14 = arith.mulf %4, %11 : vector<16x8xf32>
    %15 = arith.select %13, %11, %14 : vector<16x8xi1>, vector<16x8xf32>
    %cst_4 = arith.constant 1.000000e+00 : f32
    %16 = vector.broadcast %cst_4 : f32 to vector<16x8xf32>
    %17 = arith.subf %16, %15 : vector<16x8xf32>
    %cst_5 = arith.constant 1.000000e+00 : f32
    %18 = vector.broadcast %cst_5 : f32 to vector<16x8xf32>
    %19 = arith.addf %18, %4 : vector<16x8xf32>
    %20 = math.log %19 : vector<16x8xf32>
    %cst_6 = arith.constant 0.000000e+00 : f32
    %21 = vector.broadcast %cst_6 : f32 to vector<16x8xf32>
    %22 = arith.subf %21, %0 : vector<16x8xf32>
    %cst_7 = arith.constant 0.000000e+00 : f32
    %23 = vector.broadcast %cst_7 : f32 to vector<16x8xf32>
    %24 = arith.maximumf %22, %23 : vector<16x8xf32>
    %25 = arith.addf %24, %20 : vector<16x8xf32>
    %cst_8 = arith.constant 0.000000e+00 : f32
    %26 = vector.broadcast %cst_8 : f32 to vector<16x8xf32>
    %27 = arith.maximumf %0, %26 : vector<16x8xf32>
    %28 = arith.addf %27, %20 : vector<16x8xf32>
    %29 = arith.mulf %15, %15 : vector<16x8xf32>
    %cst_9 = arith.constant 7.500000e-01 : f32
    %30 = vector.broadcast %cst_9 : f32 to vector<16x8xf32>
    %31 = arith.mulf %30, %29 : vector<16x8xf32>
    %32 = arith.mulf %31, %28 : vector<16x8xf32>
    %33 = arith.mulf %17, %17 : vector<16x8xf32>
    %cst_10 = arith.constant 2.500000e-01 : f32
    %34 = vector.broadcast %cst_10 : f32 to vector<16x8xf32>
    %35 = arith.mulf %34, %33 : vector<16x8xf32>
    %36 = arith.mulf %35, %25 : vector<16x8xf32>
    %37 = arith.subf %36, %32 : vector<16x8xf32>
    %c0_11 = arith.constant 0 : index
    %c0_12 = arith.constant 0 : index
    %38 = vector.load %arg3[%c0_11, %c0_12] : memref<8x128xf32, #tpu.memory_space<vmem>>, vector<8x128xf32>
    %cst_13 = arith.constant dense<0.000000e+00> : vector<16x128xf32>
    %39 = tpu.matmul %37, %38, %cst_13 {dimension_numbers = #tpu.dot_dimension_numbers<[1], [0], [0], [1], [0, 0, 1, 1], [], []>} : vector<16x8xf32>, vector<8x128xf32>, vector<16x128xf32> -> vector<16x128xf32>
    %cst_14 = arith.constant 1.000000e+00 : f32
    %40 = vector.broadcast %cst_14 : f32 to vector<16x128xf32>
    %41 = arith.mulf %40, %39 : vector<16x128xf32>
    %c0_15 = arith.constant 0 : index
    %c0_16 = arith.constant 0 : index
    %42 = vector.load %arg2[%c0_15, %c0_16] : memref<16x2xf32, #tpu.memory_space<vmem>>, vector<16x2xf32>
    %43 = vector.extract_strided_slice %42 {offsets = [0, 0], sizes = [16, 1], strides = [1, 1]} : vector<16x2xf32> to vector<16x1xf32>
    %44 = vector.extract_strided_slice %42 {offsets = [0, 1], sizes = [16, 1], strides = [1, 1]} : vector<16x2xf32> to vector<16x1xf32>
    %c0_17 = arith.constant 0 : index
    %c0_18 = arith.constant 0 : index
    %45 = vector.load %arg4[%c0_17, %c0_18] : memref<2x128xf32, #tpu.memory_space<vmem>>, vector<2x128xf32>
    %46 = vector.extract_strided_slice %45 {offsets = [0, 0], sizes = [1, 128], strides = [1, 1]} : vector<2x128xf32> to vector<1x128xf32>
    %47 = vector.extract_strided_slice %45 {offsets = [1, 0], sizes = [1, 128], strides = [1, 1]} : vector<2x128xf32> to vector<1x128xf32>
    %48 = vector.broadcast %43 : vector<16x1xf32> to vector<16x128xf32>
    %49 = vector.broadcast %46 : vector<1x128xf32> to vector<16x128xf32>
    %50 = arith.subf %48, %49 : vector<16x128xf32>
    %51 = math.absf %50 : vector<16x128xf32>
    %52 = vector.broadcast %44 : vector<16x1xf32> to vector<16x128xf32>
    %53 = vector.broadcast %47 : vector<1x128xf32> to vector<16x128xf32>
    %54 = arith.subf %52, %53 : vector<16x128xf32>
    %55 = math.absf %54 : vector<16x128xf32>
    %56 = arith.addf %51, %55 : vector<16x128xf32>
    %cst_19 = arith.constant 1.000000e+00 : f32
    %57 = vector.broadcast %cst_19 : f32 to vector<16x128xf32>
    %58 = arith.mulf %57, %56 : vector<16x128xf32>
    %59 = arith.addf %41, %58 : vector<16x128xf32>
    %cst_20 = arith.constant 5.000000e-01 : f32
    %60 = vector.broadcast %cst_20 : f32 to vector<16x1xf32>
    %61 = arith.mulf %60, %44 : vector<16x1xf32>
    %62 = arith.subf %43, %61 : vector<16x1xf32>
    %cst_21 = arith.constant 5.000000e-01 : f32
    %63 = vector.broadcast %cst_21 : f32 to vector<16x1xf32>
    %64 = arith.mulf %63, %44 : vector<16x1xf32>
    %65 = arith.addf %43, %64 : vector<16x1xf32>
    %cst_22 = arith.constant 5.000000e-01 : f32
    %66 = vector.broadcast %cst_22 : f32 to vector<1x128xf32>
    %67 = arith.mulf %66, %47 : vector<1x128xf32>
    %68 = arith.subf %46, %67 : vector<1x128xf32>
    %cst_23 = arith.constant 5.000000e-01 : f32
    %69 = vector.broadcast %cst_23 : f32 to vector<1x128xf32>
    %70 = arith.mulf %69, %47 : vector<1x128xf32>
    %71 = arith.addf %46, %70 : vector<1x128xf32>
    %72 = vector.broadcast %65 : vector<16x1xf32> to vector<16x128xf32>
    %73 = vector.broadcast %71 : vector<1x128xf32> to vector<16x128xf32>
    %74 = arith.minimumf %72, %73 : vector<16x128xf32>
    %75 = vector.broadcast %62 : vector<16x1xf32> to vector<16x128xf32>
    %76 = vector.broadcast %68 : vector<1x128xf32> to vector<16x128xf32>
    %77 = arith.maximumf %75, %76 : vector<16x128xf32>
    %78 = arith.subf %74, %77 : vector<16x128xf32>
    %cst_24 = arith.constant 0.000000e+00 : f32
    %79 = vector.broadcast %cst_24 : f32 to vector<16x128xf32>
    %80 = arith.maximumf %78, %79 : vector<16x128xf32>
    %81 = arith.subf %65, %62 : vector<16x1xf32>
    %82 = arith.subf %71, %68 : vector<1x128xf32>
    %83 = vector.broadcast %81 : vector<16x1xf32> to vector<16x128xf32>
    %84 = vector.broadcast %82 : vector<1x128xf32> to vector<16x128xf32>
    %85 = arith.addf %83, %84 : vector<16x128xf32>
    %86 = arith.subf %85, %80 : vector<16x128xf32>
    %cst_25 = arith.constant 9.99999993E-9 : f32
    %87 = vector.broadcast %cst_25 : f32 to vector<16x128xf32>
    %88 = arith.maximumf %86, %87 : vector<16x128xf32>
    %89 = vector.broadcast %65 : vector<16x1xf32> to vector<16x128xf32>
    %90 = vector.broadcast %71 : vector<1x128xf32> to vector<16x128xf32>
    %91 = arith.maximumf %89, %90 : vector<16x128xf32>
    %92 = vector.broadcast %62 : vector<16x1xf32> to vector<16x128xf32>
    %93 = vector.broadcast %68 : vector<1x128xf32> to vector<16x128xf32>
    %94 = arith.minimumf %92, %93 : vector<16x128xf32>
    %95 = arith.subf %91, %94 : vector<16x128xf32>
    %cst_26 = arith.constant 9.99999993E-9 : f32
    %96 = vector.broadcast %cst_26 : f32 to vector<16x128xf32>
    %97 = arith.maximumf %95, %96 : vector<16x128xf32>
    %98 = tpu.reciprocal %88 {approx = true} : vector<16x128xf32> -> vector<16x128xf32>
    %99 = arith.mulf %88, %98 : vector<16x128xf32>
    %cst_27 = arith.constant 2.000000e+00 : f32
    %100 = vector.broadcast %cst_27 : f32 to vector<16x128xf32>
    %101 = arith.subf %100, %99 : vector<16x128xf32>
    %102 = arith.mulf %98, %101 : vector<16x128xf32>
    %103 = arith.mulf %80, %102 : vector<16x128xf32>
    %104 = arith.subf %97, %88 : vector<16x128xf32>
    %105 = tpu.reciprocal %97 {approx = true} : vector<16x128xf32> -> vector<16x128xf32>
    %106 = arith.mulf %97, %105 : vector<16x128xf32>
    %cst_28 = arith.constant 2.000000e+00 : f32
    %107 = vector.broadcast %cst_28 : f32 to vector<16x128xf32>
    %108 = arith.subf %107, %106 : vector<16x128xf32>
    %109 = arith.mulf %105, %108 : vector<16x128xf32>
    %110 = arith.mulf %104, %109 : vector<16x128xf32>
    %111 = arith.subf %103, %110 : vector<16x128xf32>
    %cst_29 = arith.constant 0.000000e+00 : f32
    %112 = vector.broadcast %cst_29 : f32 to vector<16x128xf32>
    %113 = arith.subf %112, %111 : vector<16x128xf32>
    %cst_30 = arith.constant 1.000000e+00 : f32
    %114 = vector.broadcast %cst_30 : f32 to vector<16x128xf32>
    %115 = arith.mulf %114, %113 : vector<16x128xf32>
    %116 = arith.addf %59, %115 : vector<16x128xf32>
    %c0_31 = arith.constant 0 : index
    %c0_32 = arith.constant 0 : index
    %117 = vector.load %arg5[%c0_31, %c0_32] : memref<16x128xf32, #tpu.memory_space<vmem>>, vector<16x128xf32>
    tpu.vector_store %arg5[%c0_31, %c0_32], %116 {strides = array<i32>} : memref<16x128xf32, #tpu.memory_space<vmem>>, vector<16x128xf32>,
    return
  }
  func.func @transform_0(%arg0: i32) -> (i32, i32) {
    %c0_i32 = arith.constant 0 : i32
    %c0_i32_0 = arith.constant 0 : i32
    return %arg0, %c0_i32 : i32, i32
  }
  func.func @transform_1(%arg0: i32) -> (i32, i32) {
    %c0_i32 = arith.constant 0 : i32
    %c0_i32_0 = arith.constant 0 : i32
    return %arg0, %c0_i32 : i32, i32
  }
  func.func @transform_2(%arg0: i32) -> (i32, i32) {
    %c0_i32 = arith.constant 0 : i32
    %c0_i32_0 = arith.constant 0 : i32
    %c0_i32_1 = arith.constant 0 : i32
    return %c0_i32, %c0_i32_0 : i32, i32
  }
  func.func @transform_3(%arg0: i32) -> (i32, i32) {
    %c0_i32 = arith.constant 0 : i32
    %c0_i32_0 = arith.constant 0 : i32
    %c0_i32_1 = arith.constant 0 : i32
    return %c0_i32, %c0_i32_0 : i32, i32
  }
  func.func @transform_4(%arg0: i32) -> (i32, i32) {
    %c0_i32 = arith.constant 0 : i32
    %c0_i32_0 = arith.constant 0 : i32
    return %arg0, %c0_i32 : i32, i32
  }
}

</mosaic_0001>

<bundles_post_ra>
// kernel: hungarian_cost_matrix.1
= control target key start
LH: loop header
LB: loop body
LE: loop exit
PB: predicated region body
PF: predicated region fallthrough
CT: control target
= control target key end

     0   :  { %v354_v3 = vmov 0   ;;  %vm113_vm2 = vcmask 64512   ;;  %s431_s1 = inlined_call_operand.vmem [shape: f32[16,2], index: 1, kind: input, shape index: {}]   ;;  %s432_s2 = inlined_call_operand.vmem [shape: f32[8,128], index: 2, kind: input, shape index: {}]   ;;  %s433_s0 = inlined_call_operand.vmem [shape: f32[16,8], index: 0, kind: input, shape index: {}]   ;;  %s434_s3 = inlined_call_operand.vmem [shape: f32[2,128], index: 3, kind: input, shape index: {}]   ;;  %s435_s4 = inlined_call_operand.vmem [shape: f32[16,128], index: 4, kind: output, shape index: {}]  }
   0x1   :  { %v385_v0 = vld [vmem:[%s431_s1] sm:$0xff]  ;;  %v390_v1 = vld [vmem:[%s431_s1 + $0x8] sm:$0xff]  ;;  %330 = vset.pattern.permute.xlu0 %v354_v3  ;;  %329 = vset.pattern.permute.xlu1 %v354_v3  ;;  %s355_s1 = smov 127  }
   0x2   :  { %v73_v2 = vld [vmem:[%s432_s2] sm:$0xff]  ;;  %v195_v4 = vmul.f32 0.5, %v385_v0  ;;  %v18_v6 = vld [vmem:[%s433_s0 + $0x8] sm:$0xff]  ;;  %v196_v9 = vmul.f32 0.5, %v390_v1 }
   0x3   :  { %321 = vmatprep.subr.mxu0 %v73_v2  ;;  %v17_v5 = vld [vmem:[%s433_s0] sm:$0xff]  ;;  %v20_v8 = vand.u32 2147483647, %v18_v6  ;;  %v50_v28 = vsub.f32 0.0, %v18_v6  ;;  %v56_v31 = vmax.f32 %v18_v6, 0.0  ;;  %vm38_vm1 = vcmp.ge.f32.partialorder %v18_v6, 0.0 }
   0x4   :  { %322 = vmatpush3.msra.mxu0 %v73_v2  ;;  %v19_v7 = vand.u32 2147483647, %v17_v5  ;;  %199 = vrot.lane.b32.xlu0 %v195_v4, %s355_s1  ;;  %v49_v23 = vsub.f32 0.0, %v17_v5  ;;  %vm37_vm0 = vcmp.ge.f32.partialorder %v17_v5, 0.0  ;;  %v55_v30 = vmax.f32 %v17_v5, 0.0 }
   0x5   :  { %v22_v11 = vsub.f32 0.0, %v20_v8  ;;  %v52_v38 = vmax.f32 %v50_v28, 0.0  ;;  %v76_v8 = vld [vmem:[%s434_s3] sm:$0x3] }
   0x6   :  { %v21_v10 = vsub.f32 0.0, %v19_v7  ;;  %v51_v33 = vmax.f32 %v49_v23, 0.0  ;;  %v356_v7 = vmov 1  }
   0x7   :  { %v25_v13 = vmul.f32 1.442695, %v22_v11 }
   0x8   :  { %v23_v12 = vmul.f32 1.442695, %v21_v10  ;;  %201 = vrot.lane.b32.xlu0 %v196_v9, %s355_s1  ;;  %v87_v9 = vlaneseq  ;;  %v209_v10 = vmul.f32 0.5, %v76_v8 }
   0xa   :  { %334 = vpow2.f32 %v23_v12  ;;  %v88_v11 = vshrl.u32 %v87_v9, 7  ;;  %v211_v12 = vrot.slane %v209_v10, 1 }
   0xb   :  { %336 = vpow2.f32 %v25_v13 }
   0xc   :  { %v89_v13 = vsub.s32 0, %v88_v11 }
  0x14   :  { %v335_v14 = vpop.eup %334 }
  0x15   :  { %v337_v15 = vpop.eup %336  ;;  %v27_v16 = vadd.f32 1.0, %v335_v14 }
  0x16   :  { %v28_v17 = vadd.f32 1.0, %v337_v15 }
  0x17   :  { %338 = vrcp.f32 %v27_v16 }
  0x18   :  { %340 = vrcp.f32 %v28_v17 }
  0x19   :  { %342 = vlog2.f32 %v27_v16 }
  0x1a   :  { %344 = vlog2.f32 %v28_v17 }
  0x21   :  { %v339_v18 = vpop.eup %338 }
  0x22   :  { %v31_v19 = vmul.f32 %v339_v18, %v27_v16  ;;  %v341_v20 = vpop.eup %340 }
  0x23   :  { %v343_v21 = vpop.eup %342  ;;  %v32_v24 = vmul.f32 %v341_v20, %v28_v17 }
  0x24   :  { %v33_v22 = vsub.f32 2.0, %v31_v19  ;;  %v345_v25 = vpop.eup %344  ;;  %v46_v29 = vmul.f32 0.6931472, %v343_v21 }
  0x25   :  { %v34_v27 = vsub.f32 2.0, %v32_v24  ;;  %v48_v35 = vmul.f32 0.6931472, %v345_v25 }
  0x26   :  { %v35_v26 = vmul.f32 %v339_v18, %v33_v22  ;;  %v57_v40 = vadd.f32 %v55_v30, %v46_v29  ;;  %v53_v42 = vadd.f32 %v51_v33, %v46_v29 }
  0x27   :  { %v36_v34 = vmul.f32 %v341_v20, %v34_v27  ;;  %v58_v44 = vadd.f32 %v56_v31, %v48_v35  ;;  %v54_v49 = vadd.f32 %v52_v38, %v48_v35 }
  0x28   :  { %v39_v32 = vmul.f32 %v335_v14, %v35_v26  ;;  %v214_v14 = vadd.f32 %v211_v12, %v76_v8 }
  0x29   :  { %v40_v37 = vmul.f32 %v337_v15, %v36_v34  ;;  %v213_v15 = vsub.f32 %v76_v8, %v211_v12 }
  0x2a   :  { %v41_v36 = vsel %vm37_vm0, %v35_v26, %v39_v32  ;;  %v228_v16 = vrot.slane %v214_v14, %v89_v13 }
  0x2b   :  { %v43_v39 = vsub.f32 1.0, %v41_v36  ;;  %v59_v41 = vmul.f32 %v41_v36, %v41_v36  ;;  %v42_v43 = vsel %vm38_vm1, %v36_v34, %v40_v37  ;;  %v253_v23 = vsub.f32 %v214_v14, %v213_v15 }
  0x2c   :  { %v44_v47 = vsub.f32 1.0, %v42_v43  ;;  %v60_v48 = vmul.f32 %v42_v43, %v42_v43 }
  0x2d   :  { %v61_v45 = vmul.f32 0.75, %v59_v41  ;;  %v65_v46 = vmul.f32 %v43_v39, %v43_v39  ;;  %v267_v26 = vrot.slane %v253_v23, %v89_v13 }
  0x2e   :  { %v62_v52 = vmul.f32 0.75, %v60_v48  ;;  %v66_v53 = vmul.f32 %v44_v47, %v44_v47  ;;  %v105_v48 = vsub.s32 1, %v88_v11 }
  0x2f   :  { %v63_v50 = vmul.f32 %v61_v45, %v57_v40  ;;  %v67_v51 = vmul.f32 0.25, %v65_v46 }
  0x30   :  { %v64_v55 = vmul.f32 %v62_v52, %v58_v44  ;;  %v68_v56 = vmul.f32 0.25, %v66_v53 }
  0x31   :  { %v69_v54 = vmul.f32 %v67_v51, %v53_v42  ;;  %v106_v51 = vrot.slane %v76_v8, %v105_v48 }
  0x32   :  { %v70_v58 = vmul.f32 %v68_v56, %v54_v49  ;;  %v90_v56 = vrot.slane %v76_v8, %v89_v13 }
  0x33   :  { %v71_v57 = vsub.f32 %v69_v54, %v63_v50 }
  0x34   :  { %v72_v59 = vsub.f32 %v70_v58, %v64_v55 }
  0x35   :  { %323 = vmatprep.mubr.msk.f32.mxu0 %vm113_vm2, %v71_v57 }
  0x36   :  { %324 = vmatmul.mubr.msk.f32.vlgmr.msra.gmra.mrb[0].mxu0 %vm113_vm2, %v72_v59 }
  0x76   :  { %v200_v60 = vpop.permute.xlu0 %199 }
  0x77   :  { %v205_v61 = vsub.f32 %v385_v0, %v200_v60  ;;  %v207_v62 = vadd.f32 %v200_v60, %v385_v0 }
  0x79   :  { %217 = vperm.xlu1 %329, %v207_v62   ;;  %233 = vperm.xlu0 %330, %v205_v61   ;;  %v251_v6 = vsub.f32 %v207_v62, %v205_v61 }
  0x7a   :  { %v202_v63 = vpop.permute.xlu0 %201 }
  0x7b   :  { %v206_v2 = vsub.f32 %v390_v1, %v202_v63  ;;  %v208_v4 = vadd.f32 %v202_v63, %v390_v1 }
  0x7d   :  { %v252_v5 = vsub.f32 %v208_v4, %v206_v2  ;;  %222 = vperm.xlu1 %329, %v208_v4  }
  0x7f   :  { %261 = vperm.xlu0 %330, %v252_v5  }
  0x81   :  { %238 = vperm.xlu1 %329, %v206_v2  }
  0x83   :  { %84 = vperm.xlu0 %330, %v390_v1  }
  0x85   :  { %256 = vperm.xlu1 %329, %v251_v6  }
  0x87   :  { %332 = vset.pattern.permute.xlu0 %v356_v7 }
  0x88   :  { %100 = vperm.xlu0 %332, %v390_v1   ;;  %v244_v1 = vrot.slane %v213_v15, %v89_v13 }
  0x89   :  { %79 = vperm.xlu1 %329, %v385_v0  }
  0x8c   :  { %333 = vset.pattern.permute.xlu0 %v354_v3 }
  0x8d   :  { %331 = vset.pattern.permute.xlu1 %v356_v7 }
  0x8e   :  { %96 = vperm.xlu1 %331, %v385_v0  }
  0xf8   :  { %v218_v17 = vpop.permute.xlu1 %217  ;;  %v234_v18 = vpop.permute.xlu0 %233 }
  0xf9   :  { %v274_v19 = vmax.f32 %v218_v17, %v228_v16  ;;  %v276_v3 = vmin.f32 %v234_v18, %v244_v1  ;;  %v229_v20 = vmin.f32 %v218_v17, %v228_v16  ;;  %v245_v21 = vmax.f32 %v234_v18, %v244_v1 }
  0xfb   :  { %v278_v0 = vsub.f32 %v274_v19, %v276_v3  ;;  %v417_v24 = vsub.f32 %v229_v20, %v245_v21 }
  0xfc   :  { %v223_v22 = vpop.permute.xlu1 %222 }
  0xfd   :  { %v419_v25 = vmax.f32 %v278_v0, 1e-08  ;;  %v230_v28 = vmin.f32 %v223_v22, %v228_v16  ;;  %v275_v29 = vmax.f32 %v223_v22, %v228_v16  ;;  %v249_v35 = vmax.f32 %v417_v24, 0.0 }
  0xfe   :  { %v262_v32 = vpop.permute.xlu0 %261 }
  0xff   :  { %346 = vrcp.f32 %v419_v25  ;;  %v269_v37 = vadd.f32 %v267_v26, %v262_v32 }
 0x100   :  { %v239_v27 = vpop.permute.xlu1 %238 }
 0x101   :  { %v246_v30 = vmax.f32 %v239_v27, %v244_v1  ;;  %v277_v31 = vmin.f32 %v239_v27, %v244_v1 }
 0x102   :  { %v85_v47 = vpop.permute.xlu0 %84 }
 0x103   :  { %v248_v33 = vsub.f32 %v230_v28, %v246_v30  ;;  %v279_v34 = vsub.f32 %v275_v29, %v277_v31  ;;  %v92_v4 = vsub.f32 %v85_v47, %v90_v56 }
 0x104   :  { %v257_v36 = vpop.permute.xlu1 %256 }
 0x105   :  { %v250_v38 = vmax.f32 %v248_v33, 0.0  ;;  %v281_v39 = vmax.f32 %v279_v34, 1e-08  ;;  %v268_v40 = vadd.f32 %v267_v26, %v257_v36  ;;  %v94_v8 = vand.u32 2147483647, %v92_v4 }
 0x107   :  { %v271_v41 = vsub.f32 %v269_v37, %v250_v38  ;;  %348 = vrcp.f32 %v281_v39  ;;  %v270_v42 = vsub.f32 %v268_v40, %v249_v35  ;;  %v101_v54 = vpop.permute.xlu0 %100 }
 0x108   :  { %v80_v49 = vpop.permute.xlu1 %79  ;;  %v108_v59 = vsub.f32 %v101_v54, %v106_v51 }
 0x109   :  { %v273_v43 = vmax.f32 %v271_v41, 1e-08  ;;  %v272_v44 = vmax.f32 %v270_v42, 1e-08  ;;  %v325_v45 = vpop.f32.mrb[0].mxu0  ;;  %v347_v50 = vpop.eup %346  ;;  %v91_v6 = vsub.f32 %v80_v49, %v90_v56 }
 0x10a   :  { %v186_v46 = vpop.f32.mrb[1].mxu0  ;;  %v296_v53 = vmul.f32 %v347_v50, %v419_v25  ;;  %v110_v9 = vand.u32 2147483647, %v108_v59 }
 0x10b   :  { %350 = vrcp.f32 %v273_v43  ;;  %v293_v16 = vsub.f32 %v281_v39, %v273_v43  ;;  %v292_v13 = vsub.f32 %v419_v25, %v272_v44  ;;  %v93_v1 = vand.u32 2147483647, %v91_v6 }
 0x10c   :  { %352 = vrcp.f32 %v272_v44  ;;  %v298_v61 = vsub.f32 2.0, %v296_v53  ;;  %v112_v19 = vadd.f32 %v110_v9, %v94_v8 }
 0x10d   :  { %v97_v57 = vpop.permute.xlu1 %96 }
 0x10e   :  { %v107_v62 = vsub.f32 %v97_v57, %v106_v51  ;;  %v300_v14 = vmul.f32 %v347_v50, %v298_v61  ;;  %v192_v24 = vadd.f32 %v325_v45, %v112_v19 }
 0x110   :  { %v109_v12 = vand.u32 2147483647, %v107_v62  ;;  %v302_v0 = vmul.f32 %v300_v14, %v292_v13 }
 0x111   :  { %v349_v52 = vpop.eup %348 }
 0x112   :  { %v297_v55 = vmul.f32 %v349_v52, %v281_v39  ;;  %v111_v20 = vadd.f32 %v109_v12, %v93_v1 }
 0x114   :  { %v299_v58 = vsub.f32 2.0, %v297_v55  ;;  %v187_v27 = vadd.f32 %v186_v46, %v111_v20 }
 0x115   :  { %v351_v60 = vpop.eup %350 }
 0x116   :  { %v353_v63 = vpop.eup %352  ;;  %v285_v2 = vmul.f32 %v351_v60, %v273_v43  ;;  %v301_v10 = vmul.f32 %v349_v52, %v299_v58 }
 0x117   :  { %v284_v5 = vmul.f32 %v353_v63, %v272_v44 }
 0x118   :  { %v287_v7 = vsub.f32 2.0, %v285_v2  ;;  %v303_v3 = vmul.f32 %v301_v10, %v293_v16 }
 0x119   :  { %v286_v11 = vsub.f32 2.0, %v284_v5 }
 0x11a   :  { %v289_v15 = vmul.f32 %v351_v60, %v287_v7 }
 0x11b   :  { %v288_v17 = vmul.f32 %v353_v63, %v286_v11 }
 0x11c   :  { %v291_v18 = vmul.f32 %v289_v15, %v250_v38 }
 0x11d   :  { %v290_v21 = vmul.f32 %v288_v17, %v249_v35 }
 0x11e   :  { %v305_v22 = vsub.f32 %v291_v18, %v303_v3 }
 0x11f   :  { %v304_v23 = vsub.f32 %v290_v21, %v302_v0 }
 0x120   :  { %v307_v26 = vsub.f32 0.0, %v305_v22 }
 0x121   :  { %v306_v28 = vsub.f32 0.0, %v304_v23 }
 0x122   :  { %v309_v29 = vadd.f32 %v307_v26, %v192_v24 }
 0x123   :  { %v308_v30 = vadd.f32 %v306_v28, %v187_v27 }
 0x124   :  { %311 = vst [vmem:[%s435_s4 + $0x8] sm:$0xff] %v309_v29 }
 0x125   :  { %310 = vst [vmem:[%s435_s4] sm:$0xff] %v308_v30 }

</bundles_post_ra>
